<compile_context>
chip_gen: v7x
topology: tpu7x:2x2x1
jax: 0.10.0
libtpu: 0.0.40
codegen_flags: <defaults>
</compile_context>

<pallas_src>
import jax
import jax.numpy as jnp
from jax.experimental import pallas as pl
from jax.experimental.pallas import tpu as pltpu


def _input_linear_kernel(x_ref, w_ref, b_ref, m_ref, o_ref):
    # x_ref : (TM, Cin)        row tile of flattened (batch*atoms, channels_in)
    # w_ref : (Cin, 2*Cout)    weight, transposed + column-permuted (s=0 cols | s=1 cols)
    # b_ref : (1, 2*Cout)      bias, column-permuted to match
    # m_ref : (TM, 1)          atom mask as compute-dtype (1.0 = real atom, 0.0 = padding)
    # o_ref : (2, TM, Cout)    output tile, z-dim leading (matches PyTorch permute(4,0,1,2,3))
    cout = o_ref.shape[2]
    y = jnp.dot(x_ref[...], w_ref[...], preferred_element_type=jnp.float32)
    y = (y + b_ref[...]) * m_ref[...]          # mask via multiply (no compare+select)
    o_ref[0] = y[:, :cout].astype(o_ref.dtype)
    o_ref[1] = y[:, cout:].astype(o_ref.dtype)


def input_linear_pallas(input_scalars, atom_mask, weight, bias, *, tm_max=512):
    """
    input_scalars : (B, N, channels_in)            float
    atom_mask     : (B, N)                         bool
    weight        : (2*channels_out, channels_in)  (PyTorch nn.Linear layout)
    bias          : (2*channels_out,)
    returns dict {(0, 0): (2, B, N, channels_out, 1)}
    """
    B, N, Cin = input_scalars.shape
    Cout2 = weight.shape[0]
    Cout = Cout2 // 2
    M = B * N
    dtype = input_scalars.dtype

    # One-time column permutation: PyTorch output column 2*c + s  ->  kernel column s*Cout + c.
    perm = jnp.concatenate([jnp.arange(Cout) * 2, jnp.arange(Cout) * 2 + 1])
    w_t = weight.T[:, perm]                       # (Cin, 2*Cout), columns regrouped by z-index
    b_row = bias[perm].reshape(1, Cout2)

    x_flat = input_scalars.reshape(M, Cin)
    m_flat = atom_mask.reshape(M, 1).astype(dtype)  # float mask -> multiply in kernel

    # Row-tile size: largest of up to tm_max rows; if M is small, use the full extent
    # (keeps block shapes either (8,128)-aligned or equal to the full array dims).
    TM = M if M <= tm_max else tm_max
    grid = (pl.cdiv(M, TM),)

    itemsize = jnp.dtype(dtype).itemsize
    cost = pl.CostEstimate(
        flops=2 * M * Cin * Cout2 + 2 * M * Cout2,
        transcendentals=0,
        bytes_accessed=itemsize * (M * Cin + Cin * Cout2 + Cout2 + M + 2 * M * Cout),
    )

    out = pl.pallas_call(
        _input_linear_kernel,
        out_shape=jax.ShapeDtypeStruct((2, M, Cout), dtype),
        grid=grid,
        in_specs=[
            pl.BlockSpec((TM, Cin), lambda i: (i, 0)),      # x rows: streamed per grid step
            pl.BlockSpec((Cin, Cout2), lambda i: (0, 0)),   # weight: resident across grid
            pl.BlockSpec((1, Cout2), lambda i: (0, 0)),     # bias: resident across grid
            pl.BlockSpec((TM, 1), lambda i: (i, 0)),        # mask rows: streamed
        ],
        out_specs=pl.BlockSpec((2, TM, Cout), lambda i: (0, i, 0)),
        compiler_params=pltpu.CompilerParams(
            dimension_semantics=("parallel",),              # megacore sharding on v7x; harmless on 1-TC chips
        ),
        cost_estimate=cost,
    )(x_flat, w_t, b_row, m_flat)

    # Free view: (2, M, Cout) -> (2, B, N, Cout, 1); no data movement.
    out = out.reshape(2, B, N, Cout, 1)
    return {(0, 0): out}


if __name__ == "__main__":
    key = jax.random.PRNGKey(0)
    k_x, k_m, k_w, k_b = jax.random.split(key, 4)

    B, N = 2, 8            # batch, atoms
    channels_in = 4
    channels_out = 8
    Cout2 = 2 * channels_out

    # PyTorch-style parameter shapes: weight (2*Cout, Cin), bias (2*Cout,)
    bound = 1.0 / jnp.sqrt(channels_in)
    weight = jax.random.uniform(k_w, (Cout2, channels_in), jnp.float32, -bound, bound)
    bias = jax.random.uniform(k_b, (Cout2,), jnp.float32, -bound, bound)

    # Deterministic inputs: atom-type-embedding-like features + boolean mask (some padded atoms)
    input_scalars = jax.random.normal(k_x, (B, N, channels_in), jnp.float32)
    atom_mask = jax.random.uniform(k_m, (B, N)) > 0.3

    out = input_linear_pallas(input_scalars, atom_mask, weight, bias)
    res = out[(0, 0)]
    jax.block_until_ready(res)

    # Pure-JAX reference mirroring the PyTorch forward exactly.
    ref = jnp.where(atom_mask[..., None],
                    input_scalars @ weight.T + bias,
                    jnp.float32(0.0))
    ref = jnp.transpose(ref.reshape(B, N, channels_out, 1, 2), (4, 0, 1, 2, 3))
    assert res.shape == (2, B, N, channels_out, 1), res.shape
    assert jnp.allclose(res, ref, atol=1e-5, rtol=1e-5)

    print("KERNEL_OK")
</pallas_src>

<mosaic_0001>
module attributes {stable_mosaic.version = 11 : i64} {
  func.func @_input_linear_kernel(%arg0: i32, %arg1: memref<16x4xf32, #tpu.memory_space<vmem>>, %arg2: memref<4x16xf32, #tpu.memory_space<vmem>>, %arg3: memref<1x16xf32, #tpu.memory_space<vmem>>, %arg4: memref<16x1xf32, #tpu.memory_space<vmem>>, %arg5: memref<2x16x8xf32, #tpu.memory_space<vmem>>) attributes {dimension_semantics = [#tpu.dimension_semantics<parallel>], iteration_bounds = array<i64: 1>, scalar_prefetch = 0 : i64, scratch_operands = 0 : i64, tpu.core_type = #tpu.core_type<tc>, window_params = [{transform_indices = @transform_0, window_bounds = array<i64: 16, 4>}, {pipeline_mode = #tpu.pipeline_mode<synchronous>, transform_indices = @transform_1, window_bounds = array<i64: 4, 16>}, {pipeline_mode = #tpu.pipeline_mode<synchronous>, transform_indices = @transform_2, window_bounds = array<i64: 1, 16>}, {transform_indices = @transform_3, window_bounds = array<i64: 16, 1>}, {transform_indices = @transform_4, window_bounds = array<i64: 2, 16, 8>}]} {
    %c0 = arith.constant 0 : index
    %c0_0 = arith.constant 0 : index
    %0 = vector.load %arg1[%c0, %c0_0] : memref<16x4xf32, #tpu.memory_space<vmem>>, vector<16x4xf32>
    %c0_1 = arith.constant 0 : index
    %c0_2 = arith.constant 0 : index
    %1 = vector.load %arg2[%c0_1, %c0_2] : memref<4x16xf32, #tpu.memory_space<vmem>>, vector<4x16xf32>
    %cst = arith.constant dense<0.000000e+00> : vector<16x16xf32>
    %2 = tpu.matmul %0, %1, %cst {dimension_numbers = #tpu.dot_dimension_numbers<[1], [0], [0], [1], [0, 0, 1, 1], [], []>} : vector<16x4xf32>, vector<4x16xf32>, vector<16x16xf32> -> vector<16x16xf32>
    %c0_3 = arith.constant 0 : index
    %c0_4 = arith.constant 0 : index
    %3 = vector.load %arg3[%c0_3, %c0_4] : memref<1x16xf32, #tpu.memory_space<vmem>>, vector<1x16xf32>
    %4 = vector.broadcast %3 : vector<1x16xf32> to vector<16x16xf32>
    %5 = arith.addf %2, %4 : vector<16x16xf32>
    %c0_5 = arith.constant 0 : index
    %c0_6 = arith.constant 0 : index
    %6 = vector.load %arg4[%c0_5, %c0_6] : memref<16x1xf32, #tpu.memory_space<vmem>>, vector<16x1xf32>
    %7 = vector.broadcast %6 : vector<16x1xf32> to vector<16x16xf32>
    %8 = arith.mulf %5, %7 : vector<16x16xf32>
    %9 = vector.extract_strided_slice %8 {offsets = [0, 0], sizes = [16, 8], strides = [1, 1]} : vector<16x16xf32> to vector<16x8xf32>
    %c0_7 = arith.constant 0 : index
    %c0_8 = arith.constant 0 : index
    %c0_9 = arith.constant 0 : index
    %10 = vector.load %arg5[%c0_7, %c0_8, %c0_9] : memref<2x16x8xf32, #tpu.memory_space<vmem>>, vector<1x16x8xf32>
    %11 = vector.shape_cast %10 : vector<1x16x8xf32> to vector<16x8xf32>
    %12 = vector.shape_cast %9 : vector<16x8xf32> to vector<1x16x8xf32>
    tpu.vector_store %arg5[%c0_7, %c0_8, %c0_9], %12 {strides = array<i32>} : memref<2x16x8xf32, #tpu.memory_space<vmem>>, vector<1x16x8xf32>,
    %13 = vector.extract_strided_slice %8 {offsets = [0, 8], sizes = [16, 8], strides = [1, 1]} : vector<16x16xf32> to vector<16x8xf32>
    %c1 = arith.constant 1 : index
    %c0_10 = arith.constant 0 : index
    %c0_11 = arith.constant 0 : index
    %14 = vector.load %arg5[%c1, %c0_10, %c0_11] : memref<2x16x8xf32, #tpu.memory_space<vmem>>, vector<1x16x8xf32>
    %15 = vector.shape_cast %14 : vector<1x16x8xf32> to vector<16x8xf32>
    %16 = vector.shape_cast %13 : vector<16x8xf32> to vector<1x16x8xf32>
    tpu.vector_store %arg5[%c1, %c0_10, %c0_11], %16 {strides = array<i32>} : memref<2x16x8xf32, #tpu.memory_space<vmem>>, vector<1x16x8xf32>,
    return
  }
  func.func @transform_0(%arg0: i32) -> (i32, i32) {
    %c0_i32 = arith.constant 0 : i32
    %c0_i32_0 = arith.constant 0 : i32
    return %arg0, %c0_i32 : i32, i32
  }
  func.func @transform_1(%arg0: i32) -> (i32, i32) {
    %c0_i32 = arith.constant 0 : i32
    %c0_i32_0 = arith.constant 0 : i32
    %c0_i32_1 = arith.constant 0 : i32
    return %c0_i32, %c0_i32_0 : i32, i32
  }
  func.func @transform_2(%arg0: i32) -> (i32, i32) {
    %c0_i32 = arith.constant 0 : i32
    %c0_i32_0 = arith.constant 0 : i32
    %c0_i32_1 = arith.constant 0 : i32
    return %c0_i32, %c0_i32_0 : i32, i32
  }
  func.func @transform_3(%arg0: i32) -> (i32, i32) {
    %c0_i32 = arith.constant 0 : i32
    %c0_i32_0 = arith.constant 0 : i32
    return %arg0, %c0_i32 : i32, i32
  }
  func.func @transform_4(%arg0: i32) -> (i32, i32, i32) {
    %c0_i32 = arith.constant 0 : i32
    %c0_i32_0 = arith.constant 0 : i32
    %c0_i32_1 = arith.constant 0 : i32
    return %c0_i32, %arg0, %c0_i32_0 : i32, i32, i32
  }
}

</mosaic_0001>

<bundles_post_ra>
// kernel: tpu_custom_call.1
= control target key start
LH: loop header
LB: loop body
LE: loop exit
PB: predicated region body
PF: predicated region fallthrough
CT: control target
= control target key end

     0   :  { %vm34_vm0 = vcmask 1043456   ;;  %vm27_vm1 = vcmask 31744   ;;  %v162_v3 = vmov 0   ;;  %vm127_vm2 = vcmask 64512   ;;  %s163_s27 = smov 120   ;;  %s219_s1 = inlined_call_operand.vmem [shape: f32[4,16], index: 1, kind: input, shape index: {}]   ;;  %s220_s0 = inlined_call_operand.vmem [shape: f32[16,4], index: 0, kind: input, shape index: {}]   ;;  %s221_s3 = inlined_call_operand.vmem [shape: f32[16,1], index: 3, kind: input, shape index: {}]   ;;  %s222_s2 = inlined_call_operand.vmem [shape: f32[1,16], index: 2, kind: input, shape index: {}]   ;;  %s223_s4 = inlined_call_operand.vmem [shape: f32[2,16,8], index: 4, kind: output, shape index: {}]  }
   0x1   :  { %v19_v0 = vld [vmem:[%s219_s1] sm:$0xf]  ;;  %v18_v2 = vld [vmem:[%s220_s0 + $0x8] sm:$0xff]  ;;  %161 = vset.pattern.permute.xlu0 %v162_v3 }
   0x2   :  { %v17_v1 = vld [vmem:[%s220_s0] sm:$0xff]  ;;  %154 = vmatprep.subr.msk.mxu0 %vm34_vm0, %v19_v0  ;;  %v114_v5 = vld [vmem:[%s221_s3 + $0x8] sm:$0xff] }
   0x3   :  { %156 = vmatprep.mubr.msk.f32.mxu0 %vm27_vm1, %v17_v1  ;;  %v113_v4 = vld [vmem:[%s221_s3] sm:$0xff]  ;;  %155 = vmatpush3.msk.msra.mxu0 %vm34_vm0, %v19_v0 }
   0x4   :  { %117 = vperm.xlu0 %161, %v113_v4   ;;  %157 = vmatmul.mubr.msk.f32.vlgmr.msra.gmra.mrb[0].mxu0 %vm27_vm1, %v18_v2  ;;  %v145_v7 = vld [vmem:[%s222_s2] ss:$0 sm:$0xff] }
   0x8   :  { %122 = vperm.xlu0 %161, %v114_v5  }
  0x83   :  { %v118_v6 = vpop.permute.xlu0 %117 }
  0x87   :  { %v123_v9 = vpop.permute.xlu0 %122 }
  0xd7   :  { %v158_v8 = vpop.f32.mrb[0].mxu0 }
  0xd8   :  { %v110_v10 = vadd.f32 %v158_v8, %v145_v7  ;;  %v104_v11 = vpop.f32.mrb[1].mxu0 }
  0xd9   :  { %v105_v12 = vadd.f32 %v145_v7, %v104_v11 }
  0xda   :  { %v126_v13 = vmul.f32 %v123_v9, %v110_v10 }
  0xdb   :  { %v125_v14 = vmul.f32 %v118_v6, %v105_v12 }
  0xdc   :  { %129 = vst.msk [vmem:[%s223_s4 + $0x8] sm:$0xff] %vm127_vm2, %v126_v13 }
  0xdd   :  { %132 = vrot.lane.b32.xlu1 %v125_v14, %s163_s27  ;;  %128 = vst.msk [vmem:[%s223_s4] sm:$0xff] %vm127_vm2, %v125_v14 }
  0xe1   :  { %134 = vrot.lane.b32.xlu1 %v126_v13, %s163_s27 }
 0x14f   :  { %v133_v15 = vpop.permute.xlu1 %132 }
 0x150   :  { %149 = vst.msk [vmem:[%s223_s4 + $0x10] sm:$0xff] %vm127_vm2, %v133_v15 }
 0x153   :  { %v135_v16 = vpop.permute.xlu1 %134 }
 0x154   :  { %150 = vst.msk [vmem:[%s223_s4 + $0x18] sm:$0xff] %vm127_vm2, %v135_v16 }

</bundles_post_ra>
